<compile_context>
chip_gen: v7x
topology: tpu7x:2x2x1
jax: 0.10.0
libtpu: 0.0.40
codegen_flags: <defaults>
</compile_context>

<pallas_src>
import numpy as np
import jax
import jax.numpy as jnp
from jax import lax
from jax.experimental import pallas as pl
from jax.experimental.pallas import tpu as pltpu


# ----------------------- small config (module-consistent) --------------------
N_MELS = 32
SR = 16000
WIN_LENGTH = 160
HOPSIZE = 80
N_FFT = 256
FMIN = 0.0
FMAX_AUG_RANGE = 2000
FMAX = SR // 2 - FMAX_AUG_RANGE // 2       # module default when fmax is None (eval)
N_FREQ_K = N_FFT // 2                      # 128 kept bins; Nyquist bin dropped (zero mel weight)
N_CHUNKS = -(-N_FFT // HOPSIZE)            # 4 hop-chunks per frame (80+80+80+16)
HOP_PAD = 128                              # hop rows zero-padded to one full lane tile
EXTRA_HOPS = 8                             # boundary hop rows fetched from the next tile
MAX_TILE = 2048                            # time-tile cap (frames per grid step)


def _cdiv(a, b):
    return -(-a // b)


def _round_up(a, m):
    return _cdiv(a, m) * m


# --------------------------- host-side parameter glue ------------------------
def _hann_window_sym(n):
    # torch.hann_window(n, periodic=False)
    m = np.arange(n, dtype=np.float64)
    return 0.5 - 0.5 * np.cos(2.0 * np.pi * m / (n - 1))


def _padded_window():
    # torch.stft zero-pads a short window to n_fft, centered.
    w = _hann_window_sym(WIN_LENGTH)
    left = (N_FFT - WIN_LENGTH) // 2
    right = N_FFT - WIN_LENGTH - left
    return np.pad(w, (left, right))


def _dft_weight_padded():
    # Fused windowed real/imag DFT matrix arranged for lane-aligned frames:
    #   frames (tT, 4*128) @ W (4*128, 256) -> [re | im]   (Nyquist bin dropped)
    # Row 128*c + r of W holds original DFT row 80*c + r (r < chunk width);
    # all other rows are zero, so the per-hop zero-pad lanes contribute nothing.
    w = _padded_window()                                   # (n_fft,)
    n = np.arange(N_FFT, dtype=np.float64)
    f = np.arange(N_FREQ_K, dtype=np.float64)
    ang = 2.0 * np.pi * np.outer(n, f) / N_FFT             # (n_fft, n_freq_k)
    wre = w[:, None] * np.cos(ang)
    wim = -(w[:, None]) * np.sin(ang)
    w256 = np.concatenate([wre, wim], axis=1)              # (256, 256)

    w512 = np.zeros((N_CHUNKS * HOP_PAD, 2 * N_FREQ_K), dtype=np.float64)
    for c in range(N_CHUNKS):
        width = min(HOPSIZE, N_FFT - c * HOPSIZE)          # 80, 80, 80, 16
        w512[c * HOP_PAD: c * HOP_PAD + width] = w256[c * HOPSIZE: c * HOPSIZE + width]
    return w512.astype(np.float32)                         # (512, 256)


def _kaldi_mel_banks(num_bins, n_fft, sr, low_freq, high_freq):
    # torchaudio.compliance.kaldi.get_mel_banks with vtln_warp_factor == 1.0.
    # Returns only the n_fft//2 real columns; the module's extra zero column
    # (Nyquist bin) is dropped exactly.
    num_fft_bins = n_fft // 2
    nyquist = 0.5 * sr
    if high_freq <= 0.0:
        high_freq += nyquist
    fft_bin_width = sr / n_fft

    def mel(freq):
        return 1127.0 * np.log(1.0 + freq / 700.0)

    mel_low = mel(float(low_freq))
    mel_high = mel(float(high_freq))
    mel_delta = (mel_high - mel_low) / (num_bins + 1)

    b = np.arange(num_bins, dtype=np.float64)[:, None]
    left_mel = mel_low + b * mel_delta
    center_mel = mel_low + (b + 1.0) * mel_delta
    right_mel = mel_low + (b + 2.0) * mel_delta

    m = mel(fft_bin_width * np.arange(num_fft_bins, dtype=np.float64))[None, :]
    up_slope = (m - left_mel) / (center_mel - left_mel)
    down_slope = (right_mel - m) / (right_mel - center_mel)
    bins = np.maximum(0.0, np.minimum(up_slope, down_slope))
    return bins.astype(np.float32)                          # (n_mels, n_fft//2)


def _choose_tile(T, B, max_tile):
    """Frames per grid step: as large as the cap allows, but keep at least
    2 grid steps total so both v7x TensorCores get work (cheap elsewhere)."""
    tT = min(_round_up(T, 128), _round_up(max_tile, 128))
    if B * _cdiv(T, tT) < 2 and T > 128:
        tT = max(128, _round_up(_cdiv(T, 2), 128))
    return tT, _cdiv(T, tT)


def _prepare(x, max_tile=MAX_TILE):
    """Host glue: reflect pad, reshape waveform into 128-lane hop rows (bf16),
    build the padded DFT weight and the mel filterbank."""
    B, L = x.shape
    pad = N_FFT // 2
    T = 1 + L // HOPSIZE                                    # torch.stft center=True frame count
    tT, num_tiles = _choose_tile(T, B, max_tile)
    T_pad = num_tiles * tT

    n_hops = max(T_pad + EXTRA_HOPS, _cdiv(L + 2 * pad, HOPSIZE))
    xp = jnp.pad(x.astype(jnp.float32), ((0, 0), (pad, pad)), mode="reflect")
    xp = jnp.pad(xp, ((0, 0), (0, n_hops * HOPSIZE - xp.shape[1])))
    hops = xp.reshape(B, n_hops, HOPSIZE)
    hops = jnp.pad(hops, ((0, 0), (0, 0), (0, HOP_PAD - HOPSIZE)))   # zero lanes 80..127
    hops = hops.astype(jnp.bfloat16)                                  # (B, n_hops, 128)

    w512 = jnp.asarray(_dft_weight_padded(), dtype=jnp.bfloat16)      # (512, 256)
    melb = jnp.asarray(_kaldi_mel_banks(N_MELS, N_FFT, SR, FMIN, FMAX),
                       dtype=jnp.bfloat16)                            # (32, 128)
    return hops, w512, melb, T, tT, num_tiles, T_pad


# -------------------------------- Pallas kernel -------------------------------
def _mel_kernel(hop_ref, bnd_ref, w_ref, mel_ref, out_ref):
    # hop_ref: (1, tT, 128) bf16      hop rows of this time tile (lanes 80..127 are zero pad)
    # bnd_ref: (1, 8, 128)  bf16      first hop rows of the next tile (same HBM array)
    # w_ref  : (512, 256)   bf16      padded windowed DFT matrix [re | im], zero rows at pad lanes
    # mel_ref: (32, 128)    bf16      kaldi mel filterbank (Nyquist column dropped)
    # out_ref: (1, 32, tT)  f32
    tT = hop_ref.shape[1]

    # Window buffer covering this tile plus boundary rows of the next one.
    win = jnp.concatenate([hop_ref[0].astype(jnp.float32),
                           bnd_ref[0].astype(jnp.float32)], axis=0)     # (tT+8, 128)

    # Lane-tile-aligned frame assembly:
    #   frame[t] = [hop[t] | hop[t+1] | hop[t+2] | hop[t+3]]  (4 x 128 lanes)
    # Pad lanes are killed by the zero rows of the DFT weight, so there is no
    # in-kernel masking and no misaligned lane concat.
    chunks = [win[c:c + tT, :] for c in range(N_CHUNKS)]
    frames = jnp.concatenate(chunks, axis=1).astype(jnp.bfloat16)        # (tT, 512)

    # One fused MXU matmul -> [re | im] with f32 accumulation.
    y = jnp.dot(frames, w_ref[...], preferred_element_type=jnp.float32)  # (tT, 256)
    re = y[:, :N_FREQ_K]
    im = y[:, N_FREQ_K:]
    power = (re * re + im * im).astype(jnp.bfloat16)                     # (tT, 128)

    # mel_basis @ power^T -> (32, tT): bf16 single-pass MXU matmul, f32 acc.
    # T stays on the lane axis -> dense, unmasked output stores.
    mels = lax.dot_general(mel_ref[...], power,
                           dimension_numbers=(((1,), (1,)), ((), ())),
                           preferred_element_type=jnp.float32)           # (32, tT)

    out_ref[0] = (jnp.log(mels + 1e-5) + 4.5) / 5.0


def augment_mel_stft(x, *, max_tile=MAX_TILE):
    """x: (B, L) float32 waveform -> (B, n_mels, T) float32 log-mel (eval mode)."""
    hops, w512, melb, T, tT, num_tiles, T_pad = _prepare(x, max_tile)
    B = x.shape[0]
    bnd_stride = tT // EXTRA_HOPS                           # boundary block index step

    out = pl.pallas_call(
        _mel_kernel,
        out_shape=jax.ShapeDtypeStruct((B, N_MELS, T_pad), jnp.float32),
        grid=(B, num_tiles),
        in_specs=[
            # hop rows of this tile: rows [j*tT, (j+1)*tT)
            pl.BlockSpec((1, tT, HOP_PAD), lambda b, j: (b, j, 0)),
            # boundary rows:         rows [(j+1)*tT, (j+1)*tT + 8)   (same array)
            pl.BlockSpec((1, EXTRA_HOPS, HOP_PAD),
                         lambda b, j: (b, (j + 1) * bnd_stride, 0)),
            # weights: constant index maps -> fetched once, stay resident
            pl.BlockSpec((N_CHUNKS * HOP_PAD, 2 * N_FREQ_K), lambda b, j: (0, 0)),
            pl.BlockSpec((N_MELS, N_FREQ_K), lambda b, j: (0, 0)),
        ],
        out_specs=pl.BlockSpec((1, N_MELS, tT), lambda b, j: (b, 0, j)),
        compiler_params=pltpu.CompilerParams(
            dimension_semantics=("parallel", "parallel"),
            vmem_limit_bytes=32 * 1024 * 1024),
    )(hops, hops, w512, melb)

    return out[:, :, :T]


# ----------------------------------- test ------------------------------------
def _numpy_reference(hops, w512, melb, B, T):
    """float64 reference built from the exact bf16-quantized kernel operands."""
    rows = np.asarray(hops.astype(jnp.float32)).astype(np.float64)       # (B, n_hops, 128)
    idx = np.arange(T)[:, None] + np.arange(N_CHUNKS)[None, :]           # (T, 4)
    frames = rows[:, idx, :].reshape(B, T, N_CHUNKS * HOP_PAD)           # (B, T, 512)
    w64 = np.asarray(w512.astype(jnp.float32)).astype(np.float64)        # (512, 256)
    y = frames @ w64
    power = y[..., :N_FREQ_K] ** 2 + y[..., N_FREQ_K:] ** 2
    mel64 = np.asarray(melb.astype(jnp.float32)).astype(np.float64)      # (32, 128)
    mels = np.einsum("mf,btf->bmt", mel64, power)
    return (np.log(mels + 1e-5) + 4.5) / 5.0


if __name__ == "__main__":
    key = jax.random.PRNGKey(0)
    k1, k2 = jax.random.split(key)

    # Case 1: small clip, single time tile.
    B1, L1 = 2, 800                            # -> T = 1 + 800 // 80 = 11 frames
    x1 = jax.random.normal(k1, (B1, L1), dtype=jnp.float32)
    out1 = jax.block_until_ready(augment_mel_stft(x1))
    T1 = 1 + L1 // HOPSIZE
    assert out1.shape == (B1, N_MELS, T1)
    assert out1.dtype == jnp.float32
    assert bool(jnp.all(jnp.isfinite(out1)))
    h1, w1, m1, *_ = _prepare(x1)
    ref1 = _numpy_reference(h1, w1, m1, B1, T1)
    np.testing.assert_allclose(np.asarray(out1), ref1, rtol=1e-2, atol=3e-2)

    # Case 2: multi-tile path (boundary BlockSpec, tile-edge frames, T_pad > T
    # truncation) plus the B=1 occupancy guard, with a forced small tile.
    B2, L2 = 1, 80 * 140                       # -> T = 141 frames, 2 tiles of 128
    x2 = jax.random.normal(k2, (B2, L2), dtype=jnp.float32)
    out2 = jax.block_until_ready(augment_mel_stft(x2, max_tile=128))
    T2 = 1 + L2 // HOPSIZE
    assert out2.shape == (B2, N_MELS, T2)
    assert bool(jnp.all(jnp.isfinite(out2)))
    h2, w2, m2, *_ = _prepare(x2, max_tile=128)
    ref2 = _numpy_reference(h2, w2, m2, B2, T2)
    np.testing.assert_allclose(np.asarray(out2), ref2, rtol=1e-2, atol=3e-2)

    print("KERNEL_OK")
</pallas_src>

<mosaic_0001>
module attributes {stable_mosaic.version = 11 : i64} {
  func.func @_mel_kernel(%arg0: i32, %arg1: i32, %arg2: memref<1x128x128xbf16, #tpu.memory_space<vmem>>, %arg3: memref<1x8x128xbf16, #tpu.memory_space<vmem>>, %arg4: memref<512x256xbf16, #tpu.memory_space<vmem>>, %arg5: memref<32x128xbf16, #tpu.memory_space<vmem>>, %arg6: memref<1x32x128xf32, #tpu.memory_space<vmem>>) attributes {dimension_semantics = [#tpu.dimension_semantics<parallel>, #tpu.dimension_semantics<parallel>], iteration_bounds = array<i64: 2, 1>, scalar_prefetch = 0 : i64, scratch_operands = 0 : i64, tpu.core_type = #tpu.core_type<tc>, window_params = [{transform_indices = @transform_0, window_bounds = array<i64: 1, 128, 128>}, {transform_indices = @transform_1, window_bounds = array<i64: 1, 8, 128>}, {pipeline_mode = #tpu.pipeline_mode<synchronous>, transform_indices = @transform_2, window_bounds = array<i64: 512, 256>}, {pipeline_mode = #tpu.pipeline_mode<synchronous>, transform_indices = @transform_3, window_bounds = array<i64: 32, 128>}, {transform_indices = @transform_4, window_bounds = array<i64: 1, 32, 128>}]} {
    %c0 = arith.constant 0 : index
    %c0_0 = arith.constant 0 : index
    %c0_1 = arith.constant 0 : index
    %0 = vector.load %arg2[%c0, %c0_0, %c0_1] : memref<1x128x128xbf16, #tpu.memory_space<vmem>>, vector<1x128x128xbf16>
    %1 = vector.shape_cast %0 : vector<1x128x128xbf16> to vector<128x128xbf16>
    %2 = arith.extf %1 : vector<128x128xbf16> to vector<128x128xf32>
    %c0_2 = arith.constant 0 : index
    %c0_3 = arith.constant 0 : index
    %c0_4 = arith.constant 0 : index
    %3 = vector.load %arg3[%c0_2, %c0_3, %c0_4] : memref<1x8x128xbf16, #tpu.memory_space<vmem>>, vector<1x8x128xbf16>
    %4 = vector.shape_cast %3 : vector<1x8x128xbf16> to vector<8x128xbf16>
    %5 = arith.extf %4 : vector<8x128xbf16> to vector<8x128xf32>
    %6 = tpu.concatenate %2, %5 in 0 : vector<128x128xf32>, vector<8x128xf32> -> vector<136x128xf32>
    %7 = vector.extract_strided_slice %6 {offsets = [0, 0], sizes = [128, 128], strides = [1, 1]} : vector<136x128xf32> to vector<128x128xf32>
    %8 = vector.extract_strided_slice %6 {offsets = [1, 0], sizes = [128, 128], strides = [1, 1]} : vector<136x128xf32> to vector<128x128xf32>
    %9 = vector.extract_strided_slice %6 {offsets = [2, 0], sizes = [128, 128], strides = [1, 1]} : vector<136x128xf32> to vector<128x128xf32>
    %10 = vector.extract_strided_slice %6 {offsets = [3, 0], sizes = [128, 128], strides = [1, 1]} : vector<136x128xf32> to vector<128x128xf32>
    %11 = tpu.concatenate %7, %8, %9, %10 in 1 : vector<128x128xf32>, vector<128x128xf32>, vector<128x128xf32>, vector<128x128xf32> -> vector<128x512xf32>
    %12 = arith.truncf %11 : vector<128x512xf32> to vector<128x512xbf16>
    %c0_5 = arith.constant 0 : index
    %c0_6 = arith.constant 0 : index
    %13 = vector.load %arg4[%c0_5, %c0_6] : memref<512x256xbf16, #tpu.memory_space<vmem>>, vector<512x256xbf16>
    %cst = arith.constant dense<0.000000e+00> : vector<128x256xf32>
    %14 = tpu.matmul %12, %13, %cst {dimension_numbers = #tpu.dot_dimension_numbers<[1], [0], [0], [1], [0, 0, 1, 1], [], []>} : vector<128x512xbf16>, vector<512x256xbf16>, vector<128x256xf32> -> vector<128x256xf32>
    %15 = vector.extract_strided_slice %14 {offsets = [0, 0], sizes = [128, 128], strides = [1, 1]} : vector<128x256xf32> to vector<128x128xf32>
    %16 = vector.extract_strided_slice %14 {offsets = [0, 128], sizes = [128, 128], strides = [1, 1]} : vector<128x256xf32> to vector<128x128xf32>
    %17 = arith.mulf %15, %15 : vector<128x128xf32>
    %18 = arith.mulf %16, %16 : vector<128x128xf32>
    %19 = arith.addf %17, %18 : vector<128x128xf32>
    %20 = arith.truncf %19 : vector<128x128xf32> to vector<128x128xbf16>
    %c0_7 = arith.constant 0 : index
    %c0_8 = arith.constant 0 : index
    %21 = vector.load %arg5[%c0_7, %c0_8] : memref<32x128xbf16, #tpu.memory_space<vmem>>, vector<32x128xbf16>
    %cst_9 = arith.constant dense<0.000000e+00> : vector<32x128xf32>
    %22 = tpu.matmul %21, %20, %cst_9 {dimension_numbers = #tpu.dot_dimension_numbers<[1], [1], [0], [0], [0, 0, 1, 0], [], []>} : vector<32x128xbf16>, vector<128x128xbf16>, vector<32x128xf32> -> vector<32x128xf32>
    %cst_10 = arith.constant 9.99999974E-6 : f32
    %23 = vector.broadcast %cst_10 : f32 to vector<32x128xf32>
    %24 = arith.addf %22, %23 : vector<32x128xf32>
    %25 = math.log %24 : vector<32x128xf32>
    %cst_11 = arith.constant 4.500000e+00 : f32
    %26 = vector.broadcast %cst_11 : f32 to vector<32x128xf32>
    %27 = arith.addf %25, %26 : vector<32x128xf32>
    %cst_12 = arith.constant 5.000000e+00 : f32
    %28 = vector.broadcast %cst_12 : f32 to vector<32x128xf32>
    %29 = arith.divf %27, %28 : vector<32x128xf32>
    %c0_13 = arith.constant 0 : index
    %c0_14 = arith.constant 0 : index
    %c0_15 = arith.constant 0 : index
    %30 = vector.load %arg6[%c0_13, %c0_14, %c0_15] : memref<1x32x128xf32, #tpu.memory_space<vmem>>, vector<1x32x128xf32>
    %31 = vector.shape_cast %30 : vector<1x32x128xf32> to vector<32x128xf32>
    %32 = vector.shape_cast %29 : vector<32x128xf32> to vector<1x32x128xf32>
    tpu.vector_store %arg6[%c0_13, %c0_14, %c0_15], %32 {strides = array<i32>} : memref<1x32x128xf32, #tpu.memory_space<vmem>>, vector<1x32x128xf32>,
    return
  }
  func.func @transform_0(%arg0: i32, %arg1: i32) -> (i32, i32, i32) {
    %c0_i32 = arith.constant 0 : i32
    %c0_i32_0 = arith.constant 0 : i32
    return %arg0, %arg1, %c0_i32 : i32, i32, i32
  }
  func.func @transform_1(%arg0: i32, %arg1: i32) -> (i32, i32, i32) {
    %c1_i32 = arith.constant 1 : i32
    %0 = arith.addi %arg1, %c1_i32 : i32
    %c16_i32 = arith.constant 16 : i32
    %1 = arith.muli %0, %c16_i32 : i32
    %c0_i32 = arith.constant 0 : i32
    %c0_i32_0 = arith.constant 0 : i32
    return %arg0, %1, %c0_i32 : i32, i32, i32
  }
  func.func @transform_2(%arg0: i32, %arg1: i32) -> (i32, i32) {
    %c0_i32 = arith.constant 0 : i32
    %c0_i32_0 = arith.constant 0 : i32
    %c0_i32_1 = arith.constant 0 : i32
    return %c0_i32, %c0_i32_0 : i32, i32
  }
  func.func @transform_3(%arg0: i32, %arg1: i32) -> (i32, i32) {
    %c0_i32 = arith.constant 0 : i32
    %c0_i32_0 = arith.constant 0 : i32
    %c0_i32_1 = arith.constant 0 : i32
    return %c0_i32, %c0_i32_0 : i32, i32
  }
  func.func @transform_4(%arg0: i32, %arg1: i32) -> (i32, i32, i32) {
    %c0_i32 = arith.constant 0 : i32
    %c0_i32_0 = arith.constant 0 : i32
    return %arg0, %c0_i32, %arg1 : i32, i32, i32
  }
}

</mosaic_0001>

<bundles_post_ra>
// kernel: tpu_custom_call.1
= control target key start
LH: loop header
LB: loop body
LE: loop exit
PB: predicated region body
PF: predicated region fallthrough
CT: control target
= control target key end

     0   :  { %s2518_s0 = inlined_call_operand.hbm [shape: bf16[2,136,128], index: 0, kind: input, shape index: {}]   ;;  %s2519_s1 = inlined_call_operand.hbm [shape: bf16[2,136,128], index: 1, kind: input, shape index: {}]   ;;  %s2520_s2 = inlined_call_operand.hbm [shape: bf16[512,256], index: 2, kind: input, shape index: {}]   ;;  %s2521_s3 = inlined_call_operand.hbm [shape: bf16[32,128], index: 3, kind: input, shape index: {}]   ;;  %s2522_s4 = inlined_call_operand.hbm [shape: f32[2,32,128], index: 4, kind: output, shape index: {}]  }
   0x1   :  { %2530 = sst [smem:[#allocation18_spill]] %s2518_s0 }
   0x2   :  { %2531 = sst [smem:[#allocation19_spill]] %s2520_s2 }
   0x3   :  { %2532 = sst [smem:[#allocation20_spill]] %s2521_s3 }
   0x4   :  { %9 = vsyncpa [#allocation3], 0 }
   0x5   :  { %11 = vsyncpa [#allocation3 + $0x1], 0 }
   0x6   :  { %12 = vsyncpa [#allocation6], 0 }
   0x7   :  { %14 = vsyncpa [#allocation6 + $0x1], 0 }
   0x8   :  { %15 = vsyncpa [#allocation9], 0 }
   0x9   :  { %16 = vsyncpa [#allocation4], 0 }
   0xa   :  { %18 = vsyncpa [#allocation4 + $0x1], 0  ;;  %s2080_s15 = smov 0   ;;  %s2082_s16 = smov 0  }
   0xb   :  { %s2084_s17 = smov 0   ;;  %s2086_s18 = smov 0  }
   0xc   :  { %s2088_s19 = smov 0   ;;  %s2090_s20 = smov 0  }
   0xd LB: > { %s2111_s21 = sadd.s32 4294967295, %s2042_s20   ;;  %s1457_s22 = sadd.s32 4294967294, %s2042_s20   ;;  %s2042_s20 = sphi %s2090_s20, %s24_s20   ;;  %s2038_s19 = sphi %s2088_s19, %s2563_s19   ;;  %s2034_s18 = sphi %s2086_s18, %s2562_s18   ;;  %s2030_s17 = sphi %s2084_s17, %s2561_s17   ;;  %s2026_s16 = sphi %s2082_s16, %s2560_s16   ;;  %s2022_s15 = sphi %s2080_s15, %s2559_s15  }
   0xe   : > { %p58_p0 = scmp.ne.s32.totalorder %s2026_s16, %s2022_s15  ;;  %p2523_p1 = scmp.eq.s32.totalorder %s2111_s21, 0 }
   0xf   : > { %p164_p3 = scmp.eq.s32.totalorder %s1457_s22, 1  ;;  %p1458_p5 = scmp.ge.s32.totalorder %s2042_s20, 1 }
  0x10   : > { %p2120_p4 = por %p2523_p1, %p58_p0  ;;  %p171_p7 = scmp.lt.s32.totalorder %s2042_s20, 3 }
  0x11   : > { %p2125_p6 = por %p164_p3, %p58_p0  ;;  %s2044_s26 = smov [#allocation7]  }
  0x12   : > { %s2533_s23 = scalar_select %p2120_p4, 1, 0 }
  0x13   : > { %s2534_s24 = scalar_select %p2125_p6, 1, 0 }
  0x14   : > { %p2130_p8 = pnand %p1458_p5, %p171_p7  ;;  %s183_s27 = sshll.u32 %s2044_s26, 4  ;;  %s2134_s27 = int_to_ptr.vmem [resolvable:$true] %s183_s27 }
  0x15   : > { %s2045_s29 = smov [#allocation8]   ;;  %s2537_s2 = sld [smem:[#allocation19_spill]] }
  0x16   : > { %s2535_s25 = scalar_select %p2130_p8, 1, 0 }
  0x17   : > { %p1629_p9 = pneg %p2130_p8  ;;  %s196_s30 = sshll.u32 %s2045_s29, 4  ;;  %s2145_s30 = int_to_ptr.vmem [resolvable:$true] %s196_s30 }
  0x19   : > { %p2141_p11 = pnand %p1629_p9, %p2523_p1 }
  0x1b   : > { %s1831_s7 = scalar_lea.hbm %s2537_s2, 8192  ;;  %p1833_p13 = pneg %p2141_p11 }
  0x1c   : > { %p1832_p12 = scmp.ne.s32.totalorder %s2537_s2, %s1831_s7  ;;  %p1838_p5 = scmp.lt.u32.totalorder %s1831_s7, %s2537_s2 }
  0x1e   : > { %p1834_p0 = pnand %p1833_p13, %p1832_p12 }
  0x20   : > { %p1835_p3 = pneg %p1834_p0 }
  0x22   : > { %p1840_p7 = pnand %p1838_p5, %p1835_p3 }
  0x24   : > { %1843 = shalt.err (!%p1840_p7)
}
  0x25   : > { %s1844_s12 = scalar_lea.vmem %s2134_s27, 8192  ;;  %p1852_p2 = scmp.lt.s32.totalorder %s2134_s27, %s2134_s27 }
  0x26   : > { %p1845_p9 = scmp.ne.s32.totalorder %s2134_s27, %s1844_s12  ;;  %p1853_p12 = scmp.lt.s32.totalorder %s1844_s12, %s1844_s12 }
  0x28   : > { %p1847_p10 = pnand %p1845_p9, %p1833_p13  ;;  %p1854_p0 = por %p1853_p12, %p1852_p2 }
  0x2a   : > { %p1848_p1 = pneg %p1847_p10 }
  0x2c   : > { %p1855_p6 = pnand %p1854_p0, %p1848_p1 }
  0x2e   : > { %1858 = shalt.err (!%p1855_p6)
}
  0x2f   : > { %s2046_s13 = smov 128   ;;  %s2047_s14 = smov 8  }
  0x30   : > { %1632 = dma.hbm_to_vmem [thread:$0]  (!%p2141_p11), %s2537_s2, 8192, %s2134_s27, [#allocation6], %s2046_s13, %s2046_s13, %s2047_s14  }
  0x31   : > { %s2538_s3 = sld [smem:[#allocation20_spill]] }
  0x37   : > { %s1859_s6 = scalar_lea.hbm %s2538_s3, 256 }
  0x38   : > { %p1860_p2 = scmp.ne.s32.totalorder %s2538_s3, %s1859_s6  ;;  %p1866_p10 = scmp.lt.u32.totalorder %s1859_s6, %s2538_s3 }
  0x3a   : > { %p1862_p1 = pnand %p1860_p2, %p1833_p13 }
  0x3c   : > { %p1863_p6 = pneg %p1862_p1 }
  0x3e   : > { %p1868_p3 = pnand %p1866_p10, %p1863_p6 }
  0x40   : > { %1871 = shalt.err (!%p1868_p3)
}
  0x41   : > { %s1872_s27 = scalar_lea.vmem %s2145_s30, 256  ;;  %p1880_p12 = scmp.lt.s32.totalorder %s2145_s30, %s2145_s30 }
  0x42   : > { %p1873_p5 = scmp.ne.s32.totalorder %s2145_s30, %s1872_s27  ;;  %p1881_p0 = scmp.lt.s32.totalorder %s1872_s27, %s1872_s27 }
  0x44   : > { %p1875_p7 = pnand %p1873_p5, %p1833_p13  ;;  %p1882_p2 = por %p1881_p0, %p1880_p12 }
  0x46   : > { %p1876_p9 = pneg %p1875_p7 }
  0x48   : > { %p1883_p1 = pnand %p1882_p2, %p1876_p9 }
  0x4a   : > { %1886 = shalt.err (!%p1883_p1)
}
  0x4b   : > { %s2525_s11 = smov 64   ;;  %s2049_s12 = smov 4  }
  0x4c   : > { %1635 = dma.hbm_to_vmem [thread:$0]  (!%p2141_p11), %s2538_s3, 256, %s2145_s30, [#allocation9], %s2525_s11, %s2525_s11, %s2049_s12  }
  0x4d   : > { %s36_s22 = sadd.s32 1, %s2038_s19  ;;  %s45_s26 = sadd.s32 1, %s2030_s17 }
  0x4e   : > { %p38_p13 = scmp.ge.s32.totalorder %s36_s22, 2  ;;  %p52_p6 = scmp.ne.s32.totalorder %s2030_s17, %s2026_s16 }
  0x4f   : > { %p53_p10 = scmp.eq.s32.totalorder %s2042_s20, 0  ;;  %p1649_p3 = scmp.lt.s32.totalorder %s2042_s20, 2 }
  0x50   : > { %s2565_s22 = smov (%p38_p13, %s36_s22), 0  ;;  %p2540_p7 = scmp.eq.s32.totalorder %s2111_s21, 1 }
  0x51   : > { %2539 = sst [smem:[#allocation16_spill]] %s2565_s22  ;;  %p54_p5 = por %p53_p10, %p52_p6 }
  0x52   : > { %p2212_p9 = por %p2540_p7, %p52_p6  ;;  %s40_s29 = ssub.s32 %s2038_s19, %s2565_s22 }
  0x53   : > { %s2219_s30 = sand.u32 1, %s2030_s17   ;;  %p43_p11 = scmp.eq.s32.totalorder %s40_s29, 0 }
  0x54   : > { %s2541_s28 = scalar_select %p2212_p9, 1, 0 }
  0x55   : > { %s1462_s5 = sshll.u32 %s2219_s30, 6  ;;  %s2524_s6 = smul.u32 1088, %s2038_s19 }
  0x56   : > { %s2224_s7 = scalar_select %p43_p11, %s2030_s17, %s45_s26  }
  0x57   : > { %s2543_s0 = sld [smem:[#allocation18_spill]]  ;;  %s214_s27 = scalar_lea.vmem [#allocation2], %s1462_s5 }
  0x58   : > { %2542 = sst [smem:[#allocation17_spill]] %s2224_s7  ;;  %s229_s13 = sshll.u32 %s214_s27, 4  ;;  %s2239_s13 = int_to_ptr.vmem [resolvable:$true] %s229_s13 }
  0x59   : > { %p2235_p12 = pnand %p1649_p3, %p54_p5  ;;  %s211_s29 = scalar_lea.sflag [#allocation3], %s2219_s30 }
  0x5b   : > { %p1889_p2 = pneg %p2235_p12 }
  0x5d   : > { %s2231_s10 = scalar_lea.hbm %s2543_s0, %s2524_s6  ;;  %s1892_s27 = scalar_lea.hbm %s2543_s0, 2176 }
  0x5e   : > { %s1887_s8 = scalar_lea.hbm %s2231_s10, 1024  ;;  %p1893_p6 = scmp.lt.u32.totalorder %s2231_s10, %s2543_s0 }
  0x5f   : > { %p1888_p0 = scmp.ne.s32.totalorder %s2231_s10, %s1887_s8  ;;  %p1894_p10 = scmp.lt.u32.totalorder %s1892_s27, %s1887_s8 }
  0x60   : > { %p1896_p5 = scmp.lt.u32.totalorder %s1887_s8, %s2231_s10 }
  0x61   : > { %p1890_p1 = pnand %p1889_p2, %p1888_p0  ;;  %p1895_p3 = por %p1894_p10, %p1893_p6 }
  0x63   : > { %p1891_p13 = pneg %p1890_p1  ;;  %p1897_p7 = por %p1896_p5, %p1895_p3 }
  0x65   : > { %p1898_p11 = pnand %p1897_p7, %p1891_p13 }
  0x67   : > { %1901 = shalt.err (!%p1898_p11)
}
  0x68   : > { %s1902_s26 = scalar_lea.vmem %s2239_s13, 1024  ;;  %s2050_s5 = smov [#allocation2]  }
  0x69   : > { %p1903_p0 = scmp.ne.s32.totalorder %s2239_s13, %s1902_s26  ;;  %s1907_s9 = sshll.u32 %s2050_s5, 4  ;;  %s1908_s9 = int_to_ptr.vmem [resolvable:$false] %s1907_s9 }
  0x6a   : > { %s1909_s11 = scalar_lea.vmem %s1908_s9, 2048  ;;  %p1910_p4 = scmp.lt.s32.totalorder %s2239_s13, %s1908_s9 }
  0x6b   : > { %p1905_p1 = pnand %p1903_p0, %p1889_p2  ;;  %p1911_p6 = scmp.lt.s32.totalorder %s1909_s11, %s1902_s26 }
  0x6d   : > { %p1906_p9 = pneg %p1905_p1  ;;  %p1912_p10 = por %p1911_p6, %p1910_p4 }
  0x6f   : > { %p1913_p3 = pnand %p1912_p10, %p1906_p9 }
  0x71   : > { %1916 = shalt.err (!%p1913_p3)
}
  0x72   : > { %s2545_s6 = smov 64   ;;  %s1464_s8 = sshll.u32 %s2219_s30, 2 }
  0x73   : > { %1639 = dma.hbm_to_vmem [thread:$0]  (!%p2235_p12), %s2231_s10, 1024, %s2239_s13, %s211_s29, %s2545_s6, %s2545_s6, %s2049_s12  }
  0x74   : > { %s2546_s27 = smul.u32 1088, %s2038_s19  ;;  %s243_s0 = scalar_lea.vmem [#allocation5], %s1464_s8 }
  0x75   : > { %s254_s2 = sshll.u32 %s243_s0, 4  ;;  %s2547_s3 = sand.u32 1, %s2042_s20   ;;  %s255_s2 = int_to_ptr.vmem [resolvable:$true] %s254_s2 }
  0x76   : > { %s1370_s9 = scalar_lea.hbm %s2519_s1, %s2546_s27  ;;  %s240_s22 = scalar_lea.sflag [#allocation6], %s2547_s3 }
  0x77   : > { %s2279_s11 = scalar_lea.hbm %s1370_s9, 1024  ;;  %s1947_s7 = scalar_lea.hbm %s1370_s9, 1088 }
  0x78   : > { %p1918_p4 = scmp.ne.s32.totalorder %s2279_s11, %s1947_s7  ;;  %s1922_s10 = scalar_lea.hbm %s2519_s1, 2176 }
  0x79   : > { %p1923_p5 = scmp.lt.u32.totalorder %s2279_s11, %s2519_s1  ;;  %p1924_p7 = scmp.lt.u32.totalorder %s1922_s10, %s1947_s7 }
  0x7a   : > { %p1920_p9 = pnand %p1918_p4, %p1889_p2  ;;  %p1926_p0 = scmp.lt.u32.totalorder %s1947_s7, %s2279_s11 }
  0x7b   : > { %p1925_p11 = por %p1924_p7, %p1923_p5 }
  0x7c   : > { %p1921_p13 = pneg %p1920_p9 }
  0x7d   : > { %p1927_p1 = por %p1926_p0, %p1925_p11 }
  0x7f   : > { %p1928_p6 = pnand %p1927_p1, %p1921_p13 }
  0x81   : > { %1931 = shalt.err (!%p1928_p6)
}
  0x82   : > { %s1932_s0 = scalar_lea.vmem %s255_s2, 64  ;;  %s2051_s3 = smov [#allocation5]  }
  0x83   : > { %p1933_p10 = scmp.ne.s32.totalorder %s255_s2, %s1932_s0  ;;  %s1937_s6 = sshll.u32 %s2051_s3, 4  ;;  %s1938_s6 = int_to_ptr.vmem [resolvable:$false] %s1937_s6 }
  0x84   : > { %s1939_s8 = scalar_lea.vmem %s1938_s6, 128  ;;  %p1940_p9 = scmp.lt.s32.totalorder %s255_s2, %s1938_s6 }
  0x85   : > { %p1935_p3 = pnand %p1933_p10, %p1889_p2  ;;  %p1941_p8 = scmp.lt.s32.totalorder %s1939_s8, %s1932_s0 }
  0x87   : > { %p1936_p4 = pneg %p1935_p3  ;;  %p1942_p5 = por %p1941_p8, %p1940_p9 }
  0x89   : > { %p1943_p7 = pnand %p1942_p5, %p1936_p4 }
  0x8b   : > { %1946 = shalt.err (!%p1943_p7)
}
  0x8c   : > { %1642 = dma.hbm_to_vmem [thread:$0]  (!%p2235_p12), %s2279_s11, 64, %s255_s2, %s240_s22  }
  0x8d   : > { %p2548_p13 = scmp.ne.s32.totalorder %s2535_s25, 0 }
  0x8e   : > { %s2304_s7 = sand.u32 (!%p2548_p13), 1, %s2026_s16   ;;  %p2549_p8 = scmp.ne.s32.totalorder (!%p2548_p13), %s2533_s23, 0 }
  0x8f   : > { %263 = sbr.rel (%p2548_p13) target bundleno = 763 (0x2fb), region = 36  ;;  %s1467_s27 = sshll.u32 (!%p2548_p13), %s2304_s7, 6 }
  0x90   : > { %s266_s26 = scalar_lea.sflag (!%p2548_p13), [#allocation3], %s2304_s7  ;;  %s2308_s5 = scalar_lea.vmem (!%p2548_p13), [#allocation2], %s1467_s27 }
  0x96   : > { %2001 = dma.done.wait (%p2549_p8), %s266_s26, 1024  }
  0x97   : > { %2003 = vsyncadd (%p2549_p8), %s266_s26, 4294966272  ;;  %s274_s2 = sand.u32 1, %s2111_s21   ;;  %s1468_s25 = sshll.u32 %s2304_s7, 2 }
  0x98   : > { %s275_s22 = scalar_lea.sflag [#allocation6], %s274_s2  ;;  %s2316_s14 = scalar_lea.vmem [#allocation5], %s1468_s25 }
  0x99   : > { %2005 = dma.done.wait (%p2549_p8), %s275_s22, 64  }
  0x9a   : > { %2007 = vsyncadd (%p2549_p8), %s275_s22, 4294967232  ;;  %p2550_p12 = scmp.eq.s32.totalorder %s2111_s21, 0 }
  0x9c   : > { %2009 = dma.done.wait (%p2550_p12), [#allocation6], 8192   ;;  %p2551_p2 = pmov %p2550_p12 }
  0x9e   : > { %2011 = vsyncadd (%p2551_p2), [#allocation6], 4294959104  ;;  %p2552_p11 = pmov %p2551_p2 }
  0x9f   : > { %p2553_p0 = pmov %p2551_p2 }
  0xa0   : > { %2013 = dma.done.wait (%p2552_p11), [#allocation9], 256  }
  0xa1   : > { %2015 = vsyncadd (%p2553_p0), [#allocation9], 4294967040  ;;  %v1709_v0 = vld [vmem:[#allocation7 + $0x4] ss:$8 sps:$4 sm:$0xff]   ;;  %v1713_v2 = vld [vmem:[#allocation7] ss:$8 sps:$4 sm:$0xff]  }
  0xa2   : > { %v1711_v1 = vld [vmem:[#allocation7 + $0x104] ss:$8 sps:$4 sm:$0xff]   ;;  %941 = vmatprep.subr.bf16.mxu1 %v1709_v0  ;;  %v1714_v3 = vld [vmem:[#allocation7 + $0x100] ss:$8 sps:$4 sm:$0xff]   ;;  %v1715_v4 = vld [vmem:[#allocation7 + $0x14] ss:$8 sps:$4 sm:$0xff]  }
  0xa3   : > { %1054 = vmatprep.subr.bf16.mxu0 %v1711_v1  ;;  %942 = vmatpush1.bf16.msra.mxu1 %v1713_v2  ;;  %v1717_v5 = vld [vmem:[#allocation7 + $0x114] ss:$8 sps:$4 sm:$0xff]   ;;  %v1719_v6 = vld [vmem:[#allocation7 + $0x10] ss:$8 sps:$4 sm:$0xff]   ;;  %v1721_v8 = vld [vmem:[#allocation7 + $0x24] ss:$8 sps:$4 sm:$0xff]  }
  0xa4   : > { %1055 = vmatpush1.bf16.msra.mxu0 %v1714_v3  ;;  %943 = vmatprep.subr.bf16.mxu1 %v1715_v4  ;;  %v1720_v7 = vld [vmem:[#allocation7 + $0x110] ss:$8 sps:$4 sm:$0xff]   ;;  %v1723_v9 = vld [vmem:[#allocation7 + $0x124] ss:$8 sps:$4 sm:$0xff]   ;;  %v1725_v10 = vld [vmem:[#allocation7 + $0x20] ss:$8 sps:$4 sm:$0xff]  }
  0xa5   : > { %1056 = vmatprep.subr.bf16.mxu0 %v1717_v5  ;;  %v1726_v11 = vld [vmem:[#allocation7 + $0x120] ss:$8 sps:$4 sm:$0xff]   ;;  %v1727_v12 = vld [vmem:[#allocation7 + $0x34] ss:$8 sps:$4 sm:$0xff]   ;;  %v1731_v14 = vld [vmem:[#allocation7 + $0x30] ss:$8 sps:$4 sm:$0xff]  }
  0xa6   : > { %v1729_v13 = vld [vmem:[#allocation7 + $0x134] ss:$8 sps:$4 sm:$0xff]   ;;  %v1732_v15 = vld [vmem:[#allocation7 + $0x130] ss:$8 sps:$4 sm:$0xff]   ;;  %v1733_v16 = vld [vmem:[#allocation7 + $0x44] ss:$8 sps:$4 sm:$0xff]  }
  0xa7   : > { %944 = vmatpush1.bf16.msra.mxu1 %v1719_v6  ;;  %v1735_v17 = vld [vmem:[#allocation7 + $0x144] ss:$8 sps:$4 sm:$0xff]   ;;  %v1737_v18 = vld [vmem:[#allocation7 + $0x40] ss:$8 sps:$4 sm:$0xff]   ;;  %v1739_v20 = vld [vmem:[#allocation7 + $0x54] ss:$8 sps:$4 sm:$0xff]  }
  0xa8   : > { %1057 = vmatpush1.bf16.msra.mxu0 %v1720_v7  ;;  %945 = vmatprep.subr.bf16.mxu1 %v1721_v8  ;;  %v1738_v19 = vld [vmem:[#allocation7 + $0x140] ss:$8 sps:$4 sm:$0xff]   ;;  %v1741_v21 = vld [vmem:[#allocation7 + $0x154] ss:$8 sps:$4 sm:$0xff]   ;;  %v1743_v22 = vld [vmem:[#allocation7 + $0x50] ss:$8 sps:$4 sm:$0xff]  }
  0xa9   : > { %1058 = vmatprep.subr.bf16.mxu0 %v1723_v9  ;;  %v1744_v23 = vld [vmem:[#allocation7 + $0x150] ss:$8 sps:$4 sm:$0xff]   ;;  %v1745_v24 = vld [vmem:[#allocation7 + $0x64] ss:$8 sps:$4 sm:$0xff]   ;;  %v1749_v26 = vld [vmem:[#allocation7 + $0x60] ss:$8 sps:$4 sm:$0xff]  }
  0xaa   : > { %v1747_v25 = vld [vmem:[#allocation7 + $0x164] ss:$8 sps:$4 sm:$0xff]   ;;  %v1750_v27 = vld [vmem:[#allocation7 + $0x160] ss:$8 sps:$4 sm:$0xff]   ;;  %v1751_v28 = vld [vmem:[#allocation7 + $0x74] ss:$8 sps:$4 sm:$0xff]  }
  0xab   : > { %946 = vmatpush1.bf16.msra.mxu1 %v1725_v10  ;;  %v1753_v29 = vld [vmem:[#allocation7 + $0x174] ss:$8 sps:$4 sm:$0xff]   ;;  %v1755_v30 = vld [vmem:[#allocation7 + $0x70] ss:$8 sps:$4 sm:$0xff]   ;;  %v1757_v32 = vld [vmem:[#allocation7 + $0x84] ss:$8 sps:$4 sm:$0xff]  }
  0xac   : > { %1059 = vmatpush1.bf16.msra.mxu0 %v1726_v11  ;;  %947 = vmatprep.subr.bf16.mxu1 %v1727_v12  ;;  %v1756_v31 = vld [vmem:[#allocation7 + $0x170] ss:$8 sps:$4 sm:$0xff]   ;;  %v1759_v33 = vld [vmem:[#allocation7 + $0x184] ss:$8 sps:$4 sm:$0xff]   ;;  %v1761_v34 = vld [vmem:[#allocation7 + $0x80] ss:$8 sps:$4 sm:$0xff]  }
  0xad   : > { %1060 = vmatprep.subr.bf16.mxu0 %v1729_v13  ;;  %v1762_v35 = vld [vmem:[#allocation7 + $0x180] ss:$8 sps:$4 sm:$0xff]   ;;  %v1763_v36 = vld [vmem:[#allocation7 + $0x94] ss:$8 sps:$4 sm:$0xff]   ;;  %v1767_v38 = vld [vmem:[#allocation7 + $0x90] ss:$8 sps:$4 sm:$0xff]  }
  0xae   : > { %v1765_v37 = vld [vmem:[#allocation7 + $0x194] ss:$8 sps:$4 sm:$0xff]   ;;  %v1768_v39 = vld [vmem:[#allocation7 + $0x190] ss:$8 sps:$4 sm:$0xff]   ;;  %v1769_v40 = vld [vmem:[#allocation7 + $0xa4] ss:$8 sps:$4 sm:$0xff]  }
  0xaf   : > { %948 = vmatpush1.bf16.msra.mxu1 %v1731_v14  ;;  %v1771_v41 = vld [vmem:[#allocation7 + $0x1a4] ss:$8 sps:$4 sm:$0xff]   ;;  %v1773_v42 = vld [vmem:[#allocation7 + $0xa0] ss:$8 sps:$4 sm:$0xff]   ;;  %v1775_v44 = vld [vmem:[#allocation7 + $0xb4] ss:$8 sps:$4 sm:$0xff]  }
  0xb0   : > { %1061 = vmatpush1.bf16.msra.mxu0 %v1732_v15  ;;  %949 = vmatprep.subr.bf16.mxu1 %v1733_v16  ;;  %v1774_v43 = vld [vmem:[#allocation7 + $0x1a0] ss:$8 sps:$4 sm:$0xff]   ;;  %v1777_v45 = vld [vmem:[#allocation7 + $0x1b4] ss:$8 sps:$4 sm:$0xff]   ;;  %vm375_vm0 = vcmask 1046528   ;;  %vm475_vm1 = vcmask 1044480  }
  0xb1   : > { %1062 = vmatprep.subr.bf16.mxu0 %v1735_v17  ;;  %v2331_v46 = vld [vmem:[%s2308_s5] sm:$0xff]   ;;  %v2334_v47 = vld [vmem:[%s2308_s5 + $0x8] sm:$0xff]   ;;  %v2356_v7 = vld [vmem:[%s2308_s5 + $0x10] sm:$0xff]   ;;  %vm425_vm2 = vcmask 1045504   ;;  %s1471_s21 = sshll.u32 %s2304_s7, 5  ;;  %s1551_s11 = sshll.u32 %s2034_s18, 9 }
  0xb2   : > { %v2337_v48 = vunpack.c.l.bf16 %v2331_v46  ;;  %v2340_v49 = vunpack.c.h.bf16 %v2331_v46  ;;  %v1779_v50 = vld [vmem:[#allocation7 + $0xb0] ss:$8 sps:$4 sm:$0xff]   ;;  %v1781_v52 = vld [vmem:[#allocation7 + $0xc4] ss:$8 sps:$4 sm:$0xff]   ;;  %v2343_v53 = vunpack.c.l.bf16 %v2334_v47  ;;  %v1785_v61 = vld [vmem:[#allocation7 + $0xc0] ss:$8 sps:$4 sm:$0xff]   ;;  %v343_v10 = vunpack.c.h.bf16 %v2334_v47  ;;  %s2469_s10 = scalar_lea.hbm %s2522_s4, %s1551_s11 }
  0xb3   : > { %950 = vmatpush1.bf16.msra.mxu1 %v1737_v18  ;;  %v1780_v51 = vld [vmem:[#allocation7 + $0x1b0] ss:$8 sps:$4 sm:$0xff]   ;;  %v1783_v54 = vld [vmem:[#allocation7 + $0x1c4] ss:$8 sps:$4 sm:$0xff]   ;;  %v1786_v0 = vld [vmem:[#allocation7 + $0x1c0] ss:$8 sps:$4 sm:$0xff]   ;;  %v2360_v11 = vunpack.c.l.bf16 %v2356_v7 }
  0xb4   : > { %1063 = vmatpush1.bf16.msra.mxu0 %v1738_v19  ;;  %951 = vmatprep.subr.bf16.mxu1 %v1739_v20  ;;  %v376_v55 = vrot.slane %v2337_v48, 1  ;;  %v377_v56 = vrot.slane %v2340_v49, 1  ;;  %v476_v57 = vrot.slane %v2337_v48, 3  ;;  %v477_v58 = vrot.slane %v2340_v49, 3  ;;  %v1787_v3 = vld [vmem:[#allocation7 + $0xd4] ss:$8 sps:$4 sm:$0xff]  }
  0xb5   : > { %1064 = vmatprep.subr.bf16.mxu0 %v1741_v21  ;;  %v379_v59 = vrot.slane %v2343_v53, 1  ;;  %v479_v60 = vrot.slane %v2343_v53, 3  ;;  %v1789_v4 = vld [vmem:[#allocation7 + $0x1d4] ss:$8 sps:$4 sm:$0xff]   ;;  %v1791_v8 = vld [vmem:[#allocation7 + $0xd0] ss:$8 sps:$4 sm:$0xff]  }
  0xb6   : > { %v378_v62 = vsel %vm375_vm0, %v376_v55, %v377_v56  ;;  %v478_v63 = vsel %vm475_vm1, %v476_v57, %v477_v58  ;;  %v1792_v9 = vld [vmem:[#allocation7 + $0x1d0] ss:$8 sps:$4 sm:$0xff]   ;;  %v1793_v12 = vld [vmem:[#allocation7 + $0xe4] ss:$8 sps:$4 sm:$0xff]   ;;  %v1797_v14 = vld [vmem:[#allocation7 + $0xe0] ss:$8 sps:$4 sm:$0xff]  }
  0xb7   : > { %952 = vmatpush1.bf16.msra.mxu1 %v1743_v22  ;;  %v380_v1 = vsel %vm375_vm0, %v377_v56, %v379_v59  ;;  %v480_v2 = vsel %vm475_vm1, %v477_v58, %v479_v60  ;;  %v1795_v13 = vld [vmem:[#allocation7 + $0x1e4] ss:$8 sps:$4 sm:$0xff]   ;;  %v426_v15 = vrot.slane %v2337_v48, 2  ;;  %v427_v16 = vrot.slane %v2340_v49, 2  ;;  %v1798_v17 = vld [vmem:[#allocation7 + $0x1e0] ss:$8 sps:$4 sm:$0xff]  }
  0xb8   : > { %1065 = vmatpush1.bf16.msra.mxu0 %v1744_v23  ;;  %953 = vmatprep.subr.bf16.mxu1 %v1745_v24  ;;  %v526_v5 = vpack.c.bf16 %v380_v1, %v378_v62  ;;  %v528_v6 = vpack.c.bf16 %v480_v2, %v478_v63  ;;  %v429_v18 = vrot.slane %v2343_v53, 2  ;;  %v381_v19 = vrot.slane %v343_v10, 1  ;;  %v1799_v21 = vld [vmem:[#allocation7 + $0xf4] ss:$8 sps:$4 sm:$0xff]   ;;  %s315_s23 = scalar_lea.vmem [#allocation10], %s1471_s21  ;;  %s1310_s18 = scalar_lea.sflag [#allocation4], %s2304_s7 }
  0xb9   : > { %1066 = vmatprep.subr.bf16.mxu0 %v1747_v25  ;;  %v383_v20 = vrot.slane %v2360_v11, 1  ;;  %v1801_v22 = vld [vmem:[#allocation7 + $0x1f4] ss:$8 sps:$4 sm:$0xff]   ;;  %v481_v23 = vrot.slane %v343_v10, 3  ;;  %v483_v24 = vrot.slane %v2360_v11, 3  ;;  %s1324_s9 = sshll.u32 %s315_s23, 4  ;;  %s2464_s9 = int_to_ptr.vmem [resolvable:$true] %s1324_s9 }
  0xba   : > { %973 = vmatprep.mubr.bf16.mxu1 %v526_v5  ;;  %1086 = vmatprep.mubr.bf16.mxu0 %v528_v6  ;;  %v2368_v25 = vld [vmem:[%s2308_s5 + $0x18] sm:$0xff]   ;;  %s1948_s13 = scalar_lea.vmem %s2464_s9, 512  ;;  %p2554_p6 = scmp.ne.s32.totalorder %s2541_s28, 0 }
  0xbb   : > { %954 = vmatpush1.bf16.msra.mxu1 %v1749_v26  ;;  %v428_v26 = vsel %vm425_vm2, %v426_v15, %v427_v16  ;;  %p1949_p1 = scmp.ne.s32.totalorder %s2464_s9, %s1948_s13  ;;  %s2052_s29 = smov [#allocation10]  }
  0xbc   : > { %1067 = vmatpush1.bf16.msra.mxu0 %v1750_v27  ;;  %955 = vmatprep.subr.bf16.mxu1 %v1751_v28  ;;  %v1803_v27 = vld [vmem:[#allocation7 + $0xf0] ss:$8 sps:$4 sm:$0xff]   ;;  %s1952_s0 = sshll.u32 %s2052_s29, 4  ;;  %s1953_s0 = int_to_ptr.vmem [resolvable:$false] %s1952_s0 }
  0xbd   : > { %1068 = vmatprep.subr.bf16.mxu0 %v1753_v29  ;;  %v1804_v28 = vld [vmem:[#allocation7 + $0x1f0] ss:$8 sps:$4 sm:$0xff]   ;;  %v430_v29 = vsel %vm425_vm2, %v427_v16, %v429_v18  ;;  %p1950_p10 = pnand %p1949_p1, %p2554_p6  ;;  %s1954_s3 = scalar_lea.vmem %s1953_s0, 1024 }
  0xbe   : > { %p1955_p4 = scmp.lt.s32.totalorder %s2464_s9, %s1953_s0  ;;  %p1956_p9 = scmp.lt.s32.totalorder %s1954_s3, %s1948_s13 }
  0xbf   : > { %956 = vmatpush1.bf16.msra.mxu1 %v1755_v30  ;;  %v382_v30 = vsel %vm375_vm0, %v379_v59, %v381_v19  ;;  %p1951_p3 = pneg %p1950_p10 }
  0xc0   : > { %1069 = vmatpush1.bf16.msra.mxu0 %v1756_v31  ;;  %957 = vmatprep.subr.bf16.mxu1 %v1757_v32  ;;  %v384_v31 = vsel %vm375_vm0, %v381_v19, %v383_v20  ;;  %v482_v32 = vsel %vm475_vm1, %v479_v60, %v481_v23  ;;  %p1957_p5 = por %p1956_p9, %p1955_p4 }
  0xc1   : > { %1070 = vmatprep.subr.bf16.mxu0 %v1759_v33  ;;  %v484_v33 = vsel %vm475_vm1, %v481_v23, %v483_v24 }
  0xc2   : > { %p1958_p7 = pnand %p1957_p5, %p1951_p3 }
  0xc3   : > { %958 = vmatpush1.bf16.msra.mxu1 %v1761_v34  ;;  %v345_v34 = vunpack.c.h.bf16 %v2356_v7 }
  0xc4   : > { %1071 = vmatpush1.bf16.msra.mxu0 %v1762_v35  ;;  %959 = vmatprep.subr.bf16.mxu1 %v1763_v36  ;;  %v2378_v35 = vunpack.c.l.bf16 %v2368_v25  ;;  %v527_v36 = vpack.c.bf16 %v430_v29, %v428_v26 }
  0xc5   : > { %1072 = vmatprep.subr.bf16.mxu0 %v1765_v37  ;;  %v530_v37 = vpack.c.bf16 %v384_v31, %v382_v30  ;;  %v435_v56 = vrot.slane %v345_v34, 2 }
  0xc6   : > { %v437_v57 = vrot.slane %v2378_v35, 2 }
  0xc7   : > { %960 = vmatpush1.bf16.msra.mxu1 %v1767_v38  ;;  %v532_v38 = vpack.c.bf16 %v484_v33, %v482_v32 }
  0xc8   : > { %1073 = vmatpush1.bf16.msra.mxu0 %v1768_v39  ;;  %961 = vmatprep.subr.bf16.mxu1 %v1769_v40  ;;  %v431_v39 = vrot.slane %v343_v10, 2  ;;  %v433_v40 = vrot.slane %v2360_v11, 2  ;;  %v438_v2 = vsel %vm425_vm2, %v435_v56, %v437_v57 }
  0xc9   : > { %1074 = vmatprep.subr.bf16.mxu0 %v1771_v41  ;;  %v385_v41 = vrot.slane %v345_v34, 1 }
  0xca   : > { %v432_v48 = vsel %vm425_vm2, %v429_v18, %v431_v39  ;;  %v434_v49 = vsel %vm425_vm2, %v431_v39, %v433_v40  ;;  %v436_v1 = vsel %vm425_vm2, %v433_v40, %v435_v56  ;;  %v2414_v18 = vld [vmem:[%s2308_s5 + $0x30] sm:$0xff]  }
  0xcb   : > { %962 = vmatpush1.bf16.msra.mxu1 %v1773_v42  ;;  %v387_v42 = vrot.slane %v2378_v35, 1  ;;  %v531_v55 = vpack.c.bf16 %v434_v49, %v432_v48  ;;  %v353_v39 = vunpack.c.h.bf16 %v2414_v18 }
  0xcc   : > { %1075 = vmatpush1.bf16.msra.mxu0 %v1774_v43  ;;  %963 = vmatprep.subr.bf16.mxu1 %v1775_v44  ;;  %v485_v43 = vrot.slane %v345_v34, 3  ;;  %v487_v44 = vrot.slane %v2378_v35, 3 }
  0xcd   : > { %1076 = vmatprep.subr.bf16.mxu0 %v1777_v45  ;;  %v2384_v45 = vld [vmem:[%s2308_s5 + $0x20] sm:$0xff]   ;;  %v388_v53 = vsel %vm375_vm0, %v385_v41, %v387_v42 }
  0xcf   : > { %964 = vmatpush1.bf16.msra.mxu1 %v1779_v50  ;;  %v347_v50 = vunpack.c.h.bf16 %v2368_v25 }
  0xd0   : > { %1077 = vmatpush1.bf16.msra.mxu0 %v1780_v51  ;;  %965 = vmatprep.subr.bf16.mxu1 %v1781_v52  ;;  %v2391_v51 = vunpack.c.l.bf16 %v2384_v45  ;;  %v386_v52 = vsel %vm375_vm0, %v383_v20, %v385_v41 }
  0xd1   : > { %1078 = vmatprep.subr.bf16.mxu0 %v1783_v54  ;;  %v486_v54 = vsel %vm475_vm1, %v483_v24, %v485_v43  ;;  %v534_v58 = vpack.c.bf16 %v388_v53, %v386_v52  ;;  %v389_v60 = vrot.slane %v347_v50, 1  ;;  %v489_v62 = vrot.slane %v347_v50, 3 }
  0xd2   : > { %v491_v63 = vrot.slane %v2391_v51, 3  ;;  %v401_v52 = vrot.slane %v353_v39, 1 }
  0xd3   : > { %966 = vmatpush1.bf16.msra.mxu1 %v1785_v61  ;;  %v391_v61 = vrot.slane %v2391_v51, 1  ;;  %v490_v5 = vsel %vm475_vm1, %v487_v44, %v489_v62 }
  0xd4   : > { %1079 = vmatpush1.bf16.msra.mxu0 %v1786_v0  ;;  %967 = vmatprep.subr.bf16.mxu1 %v1787_v3  ;;  %v2401_v0 = vld [vmem:[%s2308_s5 + $0x28] sm:$0xff]   ;;  %v390_v3 = vsel %vm375_vm0, %v387_v42, %v389_v60  ;;  %v492_v6 = vsel %vm475_vm1, %v489_v62, %v491_v63 }
  0xd5   : > { %1080 = vmatprep.subr.bf16.mxu0 %v1789_v4  ;;  %v392_v4 = vsel %vm375_vm0, %v389_v60, %v391_v61  ;;  %v540_v11 = vpack.c.bf16 %v492_v6, %v490_v5 }
  0xd6   : > { %v538_v10 = vpack.c.bf16 %v392_v4, %v390_v3  ;;  %v451_v3 = vrot.slane %v353_v39, 2 }
  0xd7   : > { %968 = vmatpush1.bf16.msra.mxu1 %v1791_v8  ;;  %v349_v8 = vunpack.c.h.bf16 %v2384_v45 }
  0xd8   : > { %1081 = vmatpush1.bf16.msra.mxu0 %v1792_v9  ;;  %969 = vmatprep.subr.bf16.mxu1 %v1793_v12  ;;  %v535_v9 = vpack.c.bf16 %v438_v2, %v436_v1  ;;  %v439_v12 = vrot.slane %v347_v50, 2 }
  0xd9   : > { %1082 = vmatprep.subr.bf16.mxu0 %v1795_v13  ;;  %v441_v13 = vrot.slane %v2391_v51, 2  ;;  %v493_v16 = vrot.slane %v349_v8, 3  ;;  %v443_v30 = vrot.slane %v349_v8, 2 }
  0xda   : > { %v440_v19 = vsel %vm425_vm2, %v437_v57, %v439_v12 }
  0xdb   : > { %970 = vmatpush1.bf16.msra.mxu1 %v1797_v14  ;;  %v393_v14 = vrot.slane %v349_v8, 1  ;;  %v442_v20 = vsel %vm425_vm2, %v439_v12, %v441_v13  ;;  %v494_v26 = vsel %vm475_vm1, %v491_v63, %v493_v16 }
  0xdc   : > { %1083 = vmatpush1.bf16.msra.mxu0 %v1798_v17  ;;  %971 = vmatprep.subr.bf16.mxu1 %v1799_v21  ;;  %v351_v21 = vunpack.c.h.bf16 %v2401_v0 }
  0xdd   : > { %1084 = vmatprep.subr.bf16.mxu0 %v1801_v22  ;;  %v2421_v22 = vunpack.c.l.bf16 %v2414_v18  ;;  %v394_v23 = vsel %vm375_vm0, %v391_v61, %v393_v14 }
  0xde   : > { %v397_v32 = vrot.slane %v351_v21, 1  ;;  %v497_v34 = vrot.slane %v351_v21, 3  ;;  %v447_v48 = vrot.slane %v351_v21, 2 }
  0xdf   : > { %972 = vmatpush1.bf16.msra.mxu1 %v1803_v27  ;;  %v539_v27 = vpack.c.bf16 %v442_v20, %v440_v19  ;;  %v399_v33 = vrot.slane %v2421_v22, 1  ;;  %v499_v35 = vrot.slane %v2421_v22, 3  ;;  %v449_v49 = vrot.slane %v2421_v22, 2 }
  0xe0   : > { %1085 = vmatpush1.bf16.msra.mxu0 %v1804_v28 }
  0xe1   : > { %v400_v42 = vsel %vm375_vm0, %v397_v32, %v399_v33  ;;  %v450_v57 = vsel %vm425_vm2, %v447_v48, %v449_v49 }
  0xe2   : > { %974 = vmatmul.mubr.bf16.vlgmr.msra.gmra.mrb[0].mxu1 %v2331_v46  ;;  %v488_v46 = vsel %vm475_vm1, %v485_v43, %v487_v44 }
  0xe3   : > { %1087 = vmatmul.mubr.bf16.vlgmr.msra.gmra.mrb[0].mxu0 %v527_v36  ;;  %983 = vmatprep.mubr.bf16.mxu1 %v530_v37  ;;  %v536_v59 = vpack.c.bf16 %v488_v46, %v486_v54  ;;  %v2430_v36 = vld [vmem:[%s2308_s5 + $0x38] sm:$0xff]   ;;  %v444_v37 = vsel %vm425_vm2, %v441_v13, %v443_v30  ;;  %v501_v54 = vrot.slane %v353_v39, 3 }
  0xe4   : > { %1096 = vmatprep.mubr.bf16.mxu0 %v532_v38  ;;  %v354_v40 = vunpack.c.l.bf16 %v2430_v36  ;;  %v355_v62 = vunpack.c.h.bf16 %v2430_v36 }
  0xe5   : > { %v502_v60 = vsel %vm475_vm1, %v499_v35, %v501_v54 }
  0xe6   : > { %v403_v53 = vrot.slane %v354_v40, 1  ;;  %v503_v46 = vrot.slane %v354_v40, 3  ;;  %v453_v4 = vrot.slane %v354_v40, 2  ;;  %v405_v5 = vrot.slane %v355_v62, 1 }
  0xe7   : > { %v505_v8 = vrot.slane %v355_v62, 3  ;;  %v455_v19 = vrot.slane %v355_v62, 2 }
  0xe8   : > { %v504_v61 = vsel %vm475_vm1, %v501_v54, %v503_v46 }
  0xe9   : > { %v552_v2 = vpack.c.bf16 %v504_v61, %v502_v60  ;;  %v506_v13 = vsel %vm475_vm1, %v503_v46, %v505_v8  ;;  %v456_v20 = vsel %vm425_vm2, %v453_v4, %v455_v19 }
  0xea   : > { %984 = vmatmul.mubr.bf16.gmra.mrb[4].mxu1 %v2334_v47  ;;  %v350_v47 = vunpack.c.l.bf16 %v2401_v0 }
  0xeb   : > { %1097 = vmatmul.mubr.bf16.gmra.mrb[4].mxu0 %v531_v55  ;;  %993 = vmatprep.mubr.bf16.mxu1 %v534_v58  ;;  %v356_v55 = vld [vmem:[%s2316_s14] sm:$0xf]  ;;  %v402_v58 = vsel %vm375_vm0, %v399_v33, %v401_v52 }
  0xec   : > { %1106 = vmatprep.mubr.bf16.mxu0 %v536_v59  ;;  %v395_v15 = vrot.slane %v350_v47, 1  ;;  %v495_v17 = vrot.slane %v350_v47, 3  ;;  %v445_v31 = vrot.slane %v350_v47, 2  ;;  %v404_v59 = vsel %vm375_vm0, %v401_v52, %v403_v53 }
  0xed   : > { %v357_v63 = vunpack.c.l.bf16 %v356_v55 }
  0xee   : > { %v396_v24 = vsel %vm375_vm0, %v393_v14, %v395_v15  ;;  %v446_v38 = vsel %vm425_vm2, %v443_v30, %v445_v31  ;;  %v398_v41 = vsel %vm375_vm0, %v395_v15, %v397_v32  ;;  %v498_v43 = vsel %vm475_vm1, %v495_v17, %v497_v34 }
  0xef   : > { %v542_v28 = vpack.c.bf16 %v396_v24, %v394_v23  ;;  %v543_v44 = vpack.c.bf16 %v446_v38, %v444_v37  ;;  %v546_v50 = vpack.c.bf16 %v400_v42, %v398_v41  ;;  %v448_v56 = vsel %vm425_vm2, %v445_v31, %v447_v48  ;;  %v1813_v23 = vld [vmem:[#allocation8] sm:$0xff]  }
  0xf0   : > { %v547_v1 = vpack.c.bf16 %v450_v57, %v448_v56  ;;  %v407_v6 = vrot.slane %v357_v63, 1  ;;  %v507_v47 = vrot.slane %v357_v63, 3 }
  0xf2   : > { %994 = vmatmul.mubr.bf16.gmra.mrb[8].mxu1 %v2356_v7  ;;  %v496_v7 = vsel %vm475_vm1, %v493_v16, %v495_v17  ;;  %v408_v12 = vsel %vm375_vm0, %v405_v5, %v407_v6  ;;  %v508_v14 = vsel %vm475_vm1, %v505_v8, %v507_v47 }
  0xf3   : > { %1107 = vmatmul.mubr.bf16.gmra.mrb[8].mxu0 %v535_v9  ;;  %1003 = vmatprep.mubr.bf16.mxu1 %v538_v10  ;;  %v544_v29 = vpack.c.bf16 %v496_v7, %v494_v26  ;;  %v452_v9 = vsel %vm425_vm2, %v449_v49, %v451_v3  ;;  %v454_v10 = vsel %vm425_vm2, %v451_v3, %v453_v4 }
  0xf4   : > { %1116 = vmatprep.mubr.bf16.mxu0 %v540_v11  ;;  %v406_v11 = vsel %vm375_vm0, %v403_v53, %v405_v5  ;;  %v551_v15 = vpack.c.bf16 %v454_v10, %v452_v9  ;;  %v556_v17 = vpack.c.bf16 %v508_v14, %v506_v13 }
  0xf5   : > { %v554_v16 = vpack.c.bf16 %v408_v12, %v406_v11 }
  0xfa   : > { %1004 = vmatmul.mubr.bf16.gmra.mrb[12].mxu1 %v2368_v25  ;;  %v500_v25 = vsel %vm475_vm1, %v497_v34, %v499_v35 }
  0xfb   : > { %1117 = vmatmul.mubr.bf16.gmra.mrb[12].mxu0 %v539_v27  ;;  %1013 = vmatprep.mubr.bf16.mxu1 %v542_v28  ;;  %v548_v51 = vpack.c.bf16 %v500_v25, %v498_v43 }
  0xfc   : > { %1126 = vmatprep.mubr.bf16.mxu0 %v544_v29 }
 0x102   : > { %1014 = vmatmul.mubr.bf16.gmra.mrb[16].mxu1 %v2384_v45  ;;  %v550_v45 = vpack.c.bf16 %v404_v59, %v402_v58 }
 0x103   : > { %1127 = vmatmul.mubr.bf16.gmra.mrb[16].mxu0 %v543_v44  ;;  %1023 = vmatprep.mubr.bf16.mxu1 %v546_v50 }
 0x104   : > { %1136 = vmatprep.mubr.bf16.mxu0 %v548_v51 }
 0x10a   : > { %1024 = vmatmul.mubr.bf16.gmra.mrb[20].mxu1 %v2401_v0  ;;  %v457_v0 = vrot.slane %v357_v63, 2 }
 0x10b   : > { %1137 = vmatmul.mubr.bf16.gmra.mrb[20].mxu0 %v547_v1  ;;  %1033 = vmatprep.mubr.bf16.mxu1 %v550_v45 }
 0x10c   : > { %1146 = vmatprep.mubr.bf16.mxu0 %v552_v2  ;;  %v458_v21 = vsel %vm425_vm2, %v455_v19, %v457_v0 }
 0x10d   : > { %v555_v22 = vpack.c.bf16 %v458_v21, %v456_v20 }
 0x112   : > { %1034 = vmatmul.mubr.bf16.gmra.mrb[24].mxu1 %v2414_v18 }
 0x113   : > { %1147 = vmatmul.mubr.bf16.gmra.mrb[24].mxu0 %v551_v15  ;;  %1043 = vmatprep.mubr.bf16.mxu1 %v554_v16 }
 0x114   : > { %1156 = vmatprep.mubr.bf16.mxu0 %v556_v17 }
 0x11a   : > { %1044 = vmatmul.mubr.bf16.gmra.mrb[28].mxu1 %v2430_v36 }
 0x11b   : > { %1157 = vmatmul.mubr.bf16.gmra.mrb[28].mxu0 %v555_v22  ;;  %1578 = vmatprep.mubr.bf16.mxu1 %v1813_v23 }
 0x1b5   : > { %v975_v24 = vpop.f32.mrb[0].mxu1 }
 0x1b6   : > { %v1088_v26 = vpop.f32.mrb[0].mxu0  ;;  %v977_v27 = vpop.f32.mrb[1].mxu1 }
 0x1b7   : > { %v1089_v7 = vadd.f32 %v1088_v26, %v975_v24  ;;  %v1090_v28 = vpop.f32.mrb[1].mxu0  ;;  %v979_v18 = vpop.f32.mrb[2].mxu1 }
 0x1b8   : > { %v1091_v29 = vadd.f32 %v1090_v28, %v977_v27  ;;  %v1092_v30 = vpop.f32.mrb[2].mxu0  ;;  %v981_v33 = vpop.f32.mrb[3].mxu1 }
 0x1b9   : > { %v1167_v31 = vmul.f32 %v1089_v7, %v1089_v7  ;;  %v1093_v32 = vadd.f32 %v1092_v30, %v979_v18  ;;  %v1094_v34 = vpop.f32.mrb[3].mxu0 }
 0x1ba   : > { %v1183_v35 = vmul.f32 %v1091_v29, %v1091_v29  ;;  %v1095_v37 = vadd.f32 %v1094_v34, %v981_v33 }
 0x1bb   : > { %v1168_v38 = vmul.f32 %v1093_v32, %v1093_v32 }
 0x1bc   : > { %v1199_v39 = vadd.f32 %v1183_v35, %v1167_v31  ;;  %v1184_v36 = vmul.f32 %v1095_v37, %v1095_v37 }
 0x1bd   : > { %v985_v41 = vpop.f32.mrb[4].mxu1 }
 0x1be   : > { %v1200_v40 = vadd.f32 %v1184_v36, %v1168_v38  ;;  %v1098_v42 = vpop.f32.mrb[4].mxu0  ;;  %v987_v25 = vpop.f32.mrb[5].mxu1 }
 0x1bf   : > { %v1099_v43 = vadd.f32 %v1098_v42, %v985_v41  ;;  %v1100_v44 = vpop.f32.mrb[5].mxu0  ;;  %v989_v49 = vpop.f32.mrb[6].mxu1 }
 0x1c0   : > { %v1101_v48 = vadd.f32 %v1100_v44, %v987_v25  ;;  %v1102_v50 = vpop.f32.mrb[6].mxu0  ;;  %v1215_v51 = vpack.c.bf16 %v1200_v40, %v1199_v39  ;;  %v991_v54 = vpop.f32.mrb[7].mxu1 }
 0x1c1   : > { %v1169_v52 = vmul.f32 %v1099_v43, %v1099_v43  ;;  %v1103_v53 = vadd.f32 %v1102_v50, %v989_v49  ;;  %v1104_v46 = vpop.f32.mrb[7].mxu0 }
 0x1c2   : > { %v1185_v55 = vmul.f32 %v1101_v48, %v1101_v48  ;;  %v1105_v56 = vadd.f32 %v1104_v46, %v991_v54  ;;  %1562 = vmatprep.subr.bf16.mxu1 %v1215_v51 }
 0x1c3   : > { %v1170_v57 = vmul.f32 %v1103_v53, %v1103_v53  ;;  %1563 = vmatpush3.bf16.xpose.msra.mxu1 %v1215_v51 }
 0x1c4   : > { %v1201_v58 = vadd.f32 %v1185_v55, %v1169_v52  ;;  %v1186_v59 = vmul.f32 %v1105_v56, %v1105_v56 }
 0x1c5   : > { %v995_v61 = vpop.f32.mrb[8].mxu1 }
 0x1c6   : > { %v1202_v60 = vadd.f32 %v1186_v59, %v1170_v57  ;;  %v1108_v62 = vpop.f32.mrb[8].mxu0  ;;  %v997_v1 = vpop.f32.mrb[9].mxu1 }
 0x1c7   : > { %v1109_v63 = vadd.f32 %v1108_v62, %v995_v61  ;;  %v1110_v45 = vpop.f32.mrb[9].mxu0  ;;  %v999_v3 = vpop.f32.mrb[10].mxu1 }
 0x1c8   : > { %v1111_v2 = vadd.f32 %v1110_v45, %v997_v1  ;;  %v1112_v4 = vpop.f32.mrb[10].mxu0  ;;  %v1216_v5 = vpack.c.bf16 %v1202_v60, %v1201_v58  ;;  %v1001_v47 = vpop.f32.mrb[11].mxu1 }
 0x1c9   : > { %v1171_v6 = vmul.f32 %v1109_v63, %v1109_v63  ;;  %v1113_v8 = vadd.f32 %v1112_v4, %v999_v3  ;;  %v1114_v9 = vpop.f32.mrb[11].mxu0 }
 0x1ca   : > { %v1187_v10 = vmul.f32 %v1111_v2, %v1111_v2  ;;  %v1115_v11 = vadd.f32 %v1114_v9, %v1001_v47  ;;  %1564 = vmatprep.subr.bf16.mxu1 %v1216_v5 }
 0x1cb   : > { %v1172_v12 = vmul.f32 %v1113_v8, %v1113_v8  ;;  %1565 = vmatpush3.bf16.xpose.msra.mxu1 %v1216_v5 }
 0x1cc   : > { %v1203_v13 = vadd.f32 %v1187_v10, %v1171_v6  ;;  %v1188_v14 = vmul.f32 %v1115_v11, %v1115_v11 }
 0x1cd   : > { %v1005_v16 = vpop.f32.mrb[12].mxu1 }
 0x1ce   : > { %v1204_v15 = vadd.f32 %v1188_v14, %v1172_v12  ;;  %v1118_v17 = vpop.f32.mrb[12].mxu0  ;;  %v1007_v0 = vpop.f32.mrb[13].mxu1 }
 0x1cf   : > { %v1119_v19 = vadd.f32 %v1118_v17, %v1005_v16  ;;  %v1120_v20 = vpop.f32.mrb[13].mxu0  ;;  %v1009_v22 = vpop.f32.mrb[14].mxu1 }
 0x1d0   : > { %v1121_v21 = vadd.f32 %v1120_v20, %v1007_v0  ;;  %v1122_v23 = vpop.f32.mrb[14].mxu0  ;;  %v1217_v24 = vpack.c.bf16 %v1204_v15, %v1203_v13  ;;  %v1011_v27 = vpop.f32.mrb[15].mxu1 }
 0x1d1   : > { %v1173_v26 = vmul.f32 %v1119_v19, %v1119_v19  ;;  %v1123_v7 = vadd.f32 %v1122_v23, %v1009_v22  ;;  %v1124_v28 = vpop.f32.mrb[15].mxu0 }
 0x1d2   : > { %v1189_v29 = vmul.f32 %v1121_v21, %v1121_v21  ;;  %v1125_v18 = vadd.f32 %v1124_v28, %v1011_v27  ;;  %1566 = vmatprep.subr.bf16.mxu1 %v1217_v24 }
 0x1d3   : > { %v1174_v30 = vmul.f32 %v1123_v7, %v1123_v7  ;;  %1567 = vmatpush3.bf16.xpose.msra.mxu1 %v1217_v24 }
 0x1d4   : > { %v1205_v31 = vadd.f32 %v1189_v29, %v1173_v26  ;;  %v1190_v32 = vmul.f32 %v1125_v18, %v1125_v18 }
 0x1d5   : > { %v1015_v34 = vpop.f32.mrb[16].mxu1 }
 0x1d6   : > { %v1206_v33 = vadd.f32 %v1190_v32, %v1174_v30  ;;  %v1128_v35 = vpop.f32.mrb[16].mxu0  ;;  %v1017_v38 = vpop.f32.mrb[17].mxu1 }
 0x1d7   : > { %v1129_v37 = vadd.f32 %v1128_v35, %v1015_v34  ;;  %v1130_v39 = vpop.f32.mrb[17].mxu0  ;;  %v1019_v40 = vpop.f32.mrb[18].mxu1 }
 0x1d8   : > { %v1131_v36 = vadd.f32 %v1130_v39, %v1017_v38  ;;  %v1132_v41 = vpop.f32.mrb[18].mxu0  ;;  %v1218_v42 = vpack.c.bf16 %v1206_v33, %v1205_v31  ;;  %v1021_v44 = vpop.f32.mrb[19].mxu1 }
 0x1d9   : > { %v1175_v43 = vmul.f32 %v1129_v37, %v1129_v37  ;;  %v1133_v25 = vadd.f32 %v1132_v41, %v1019_v40  ;;  %v1134_v48 = vpop.f32.mrb[19].mxu0 }
 0x1da   : > { %v1191_v49 = vmul.f32 %v1131_v36, %v1131_v36  ;;  %v1135_v50 = vadd.f32 %v1134_v48, %v1021_v44  ;;  %1568 = vmatprep.subr.bf16.mxu1 %v1218_v42 }
 0x1db   : > { %v1176_v51 = vmul.f32 %v1133_v25, %v1133_v25  ;;  %1569 = vmatpush3.bf16.xpose.msra.mxu1 %v1218_v42 }
 0x1dc   : > { %v1207_v52 = vadd.f32 %v1191_v49, %v1175_v43  ;;  %v1192_v53 = vmul.f32 %v1135_v50, %v1135_v50  ;;  %v1814_v49 = vld [vmem:[#allocation8 + $0x8] sm:$0xff]  }
 0x1dd   : > { %v1025_v46 = vpop.f32.mrb[20].mxu1 }
 0x1de   : > { %v1208_v54 = vadd.f32 %v1192_v53, %v1176_v51  ;;  %v1138_v55 = vpop.f32.mrb[20].mxu0  ;;  %v1027_v57 = vpop.f32.mrb[21].mxu1 }
 0x1df   : > { %v1139_v56 = vadd.f32 %v1138_v55, %v1025_v46  ;;  %v1140_v58 = vpop.f32.mrb[21].mxu0  ;;  %v1029_v60 = vpop.f32.mrb[22].mxu1 }
 0x1e0   : > { %v1141_v59 = vadd.f32 %v1140_v58, %v1027_v57  ;;  %v1142_v61 = vpop.f32.mrb[22].mxu0  ;;  %v1219_v62 = vpack.c.bf16 %v1208_v54, %v1207_v52  ;;  %v1031_v45 = vpop.f32.mrb[23].mxu1 }
 0x1e1   : > { %v1177_v63 = vmul.f32 %v1139_v56, %v1139_v56  ;;  %v1143_v1 = vadd.f32 %v1142_v61, %v1029_v60  ;;  %v1144_v2 = vpop.f32.mrb[23].mxu0 }
 0x1e2   : > { %v1193_v3 = vmul.f32 %v1141_v59, %v1141_v59  ;;  %v1145_v4 = vadd.f32 %v1144_v2, %v1031_v45  ;;  %1570 = vmatprep.subr.bf16.mxu1 %v1219_v62 }
 0x1e3   : > { %v1178_v5 = vmul.f32 %v1143_v1, %v1143_v1  ;;  %1571 = vmatpush3.bf16.xpose.msra.mxu1 %v1219_v62 }
 0x1e4   : > { %v1209_v6 = vadd.f32 %v1193_v3, %v1177_v63  ;;  %v1194_v8 = vmul.f32 %v1145_v4, %v1145_v4 }
 0x1e5   : > { %v1035_v9 = vpop.f32.mrb[24].mxu1 }
 0x1e6   : > { %v1210_v47 = vadd.f32 %v1194_v8, %v1178_v5  ;;  %v1148_v10 = vpop.f32.mrb[24].mxu0  ;;  %v1037_v12 = vpop.f32.mrb[25].mxu1 }
 0x1e7   : > { %v1149_v11 = vadd.f32 %v1148_v10, %v1035_v9  ;;  %v1150_v13 = vpop.f32.mrb[25].mxu0  ;;  %v1039_v15 = vpop.f32.mrb[26].mxu1 }
 0x1e8   : > { %v1151_v14 = vadd.f32 %v1150_v13, %v1037_v12  ;;  %v1152_v16 = vpop.f32.mrb[26].mxu0  ;;  %v1220_v17 = vpack.c.bf16 %v1210_v47, %v1209_v6  ;;  %v1041_v20 = vpop.f32.mrb[27].mxu1 }
 0x1e9   : > { %v1179_v19 = vmul.f32 %v1149_v11, %v1149_v11  ;;  %v1153_v0 = vadd.f32 %v1152_v16, %v1039_v15  ;;  %v1154_v21 = vpop.f32.mrb[27].mxu0 }
 0x1ea   : > { %v1195_v22 = vmul.f32 %v1151_v14, %v1151_v14  ;;  %v1155_v23 = vadd.f32 %v1154_v21, %v1041_v20  ;;  %1572 = vmatprep.subr.bf16.mxu1 %v1220_v17 }
 0x1eb   : > { %v1180_v24 = vmul.f32 %v1153_v0, %v1153_v0  ;;  %1573 = vmatpush3.bf16.xpose.msra.mxu1 %v1220_v17 }
 0x1ec   : > { %v1211_v26 = vadd.f32 %v1195_v22, %v1179_v19  ;;  %v1196_v7 = vmul.f32 %v1155_v23, %v1155_v23 }
 0x1ed   : > { %v1045_v28 = vpop.f32.mrb[28].mxu1 }
 0x1ee   : > { %v1212_v27 = vadd.f32 %v1196_v7, %v1180_v24  ;;  %v1158_v29 = vpop.f32.mrb[28].mxu0  ;;  %v1047_v30 = vpop.f32.mrb[29].mxu1 }
 0x1ef   : > { %v1159_v18 = vadd.f32 %v1158_v29, %v1045_v28  ;;  %v1160_v31 = vpop.f32.mrb[29].mxu0  ;;  %v1049_v33 = vpop.f32.mrb[30].mxu1 }
 0x1f0   : > { %v1161_v32 = vadd.f32 %v1160_v31, %v1047_v30  ;;  %v1162_v34 = vpop.f32.mrb[30].mxu0  ;;  %v1221_v35 = vpack.c.bf16 %v1212_v27, %v1211_v26  ;;  %v1051_v39 = vpop.f32.mrb[31].mxu1 }
 0x1f1   : > { %v1181_v37 = vmul.f32 %v1159_v18, %v1159_v18  ;;  %v1163_v38 = vadd.f32 %v1162_v34, %v1049_v33  ;;  %v1164_v36 = vpop.f32.mrb[31].mxu0 }
 0x1f2   : > { %v1197_v40 = vmul.f32 %v1161_v32, %v1161_v32  ;;  %v1165_v41 = vadd.f32 %v1164_v36, %v1051_v39  ;;  %1574 = vmatprep.subr.bf16.mxu1 %v1221_v35 }
 0x1f3   : > { %v1182_v42 = vmul.f32 %v1163_v38, %v1163_v38  ;;  %1575 = vmatpush3.bf16.xpose.msra.mxu1 %v1221_v35 }
 0x1f4   : > { %v1213_v43 = vadd.f32 %v1197_v40, %v1181_v37  ;;  %v1198_v25 = vmul.f32 %v1165_v41, %v1165_v41 }
 0x1f6   : > { %v1214_v44 = vadd.f32 %v1198_v25, %v1182_v42 }
 0x1f8   : > { %v1222_v48 = vpack.c.bf16 %v1214_v44, %v1213_v43 }
 0x1fa   : > { %1576 = vmatprep.subr.bf16.mxu1 %v1222_v48 }
 0x1fb   : > { %1577 = vmatpush3.bf16.xpose.msra.mxu1 %v1222_v48 }
 0x202   : > { %1579 = vmatmul.mubr.bf16.vlgmr.msra.gmra.mrb[32].mxu1 %v1814_v49 }
 0x2d5   : > { %v1580_v50 = vpop.f32.mrb[32].mxu1 }
 0x2d6   : > { %v1282_v51 = vadd.f32 1e-05, %v1580_v50  ;;  %v1273_v52 = vpop.f32.mrb[33].mxu1 }
 0x2d7   : > { %v1274_v53 = vadd.f32 1e-05, %v1273_v52  ;;  %v1581_v54 = vpop.f32.mrb[34].mxu1 }
 0x2d8   : > { %1823 = vlog2.f32 %v1282_v51  ;;  %v1285_v46 = vadd.f32 1e-05, %v1581_v54  ;;  %v1276_v55 = vpop.f32.mrb[35].mxu1 }
 0x2d9   : > { %1825 = vlog2.f32 %v1274_v53  ;;  %v1277_v56 = vadd.f32 1e-05, %v1276_v55 }
 0x2da   : > { %1827 = vlog2.f32 %v1285_v46 }
 0x2db   : > { %1829 = vlog2.f32 %v1277_v56 }
 0x2e2   : > { %v1824_v57 = vpop.eup %1823 }
 0x2e3   : > { %v1826_v58 = vpop.eup %1825  ;;  %v1293_v59 = vmul.f32 0.6931472, %v1824_v57 }
 0x2e4   : > { %v1828_v60 = vpop.eup %1827  ;;  %v1289_v61 = vmul.f32 0.6931472, %v1826_v58 }
 0x2e5   : > { %v1830_v62 = vpop.eup %1829  ;;  %v1298_v63 = vadd.f32 4.5, %v1293_v59  ;;  %v1295_v1 = vmul.f32 0.6931472, %v1828_v60 }
 0x2e6   : > { %v1296_v45 = vadd.f32 4.5, %v1289_v61  ;;  %v1291_v2 = vmul.f32 0.6931472, %v1830_v62 }
 0x2e7   : > { %v1303_v3 = vmul.f32 0.2, %v1298_v63  ;;  %v1299_v4 = vadd.f32 4.5, %v1295_v1 }
 0x2e8   : > { %v1301_v5 = vmul.f32 0.2, %v1296_v45  ;;  %v1297_v6 = vadd.f32 4.5, %v1291_v2 }
 0x2e9   : > { %1307 = vst [vmem:[%s315_s23 + $0x10] sm:$0xff] %v1303_v3  ;;  %v1304_v8 = vmul.f32 0.2, %v1299_v4 }
 0x2ea   : > { %1305 = vst [vmem:[%s315_s23] sm:$0xff] %v1301_v5  ;;  %v1302_v47 = vmul.f32 0.2, %v1297_v6 }
 0x2eb   : > { %1308 = vst [vmem:[%s315_s23 + $0x18] sm:$0xff] %v1304_v8 }
 0x2ec   : > { %1306 = vst [vmem:[%s315_s23 + $0x8] sm:$0xff] %v1302_v47 }
 0x2ed   : > { %1961 = shalt.err (!%p1958_p7)
}
 0x2ee   : > { %s1962_s6 = scalar_lea.hbm %s2469_s10, 512  ;;  %s1966_s26 = scalar_lea.hbm %s2522_s4, 1024 }
 0x2ef   : > { %p1963_p13 = scmp.ne.s32.totalorder %s2469_s10, %s1962_s6  ;;  %p1967_p2 = scmp.lt.u32.totalorder %s2469_s10, %s2522_s4 }
 0x2f0   : > { %p1968_p11 = scmp.lt.u32.totalorder %s1966_s26, %s1962_s6  ;;  %p1970_p1 = scmp.lt.u32.totalorder %s1962_s6, %s2469_s10 }
 0x2f1   : > { %p1964_p8 = pnand %p1963_p13, %p2554_p6 }
 0x2f2   : > { %p1969_p0 = por %p1968_p11, %p1967_p2 }
 0x2f3   : > { %p1965_p12 = pneg %p1964_p8 }
 0x2f4   : > { %p1971_p10 = por %p1970_p1, %p1969_p0 }
 0x2f6   : > { %p1972_p3 = pnand %p1971_p10, %p1965_p12 }
 0x2f8   : > { %1975 = shalt.err (!%p1972_p3)
}
 0x2f9   : > { %s2053_s25 = smov 128   ;;  %s2054_s22 = smov 8  }
 0x2fa   : > { %1627 = dma.vmem_to_hbm [thread:$0]  (%p2554_p6), %s2464_s9, 512, %s2469_s10, %s1310_s18, %s2053_s25, %s2053_s25, %s2054_s22  }
 0x2fb PF: > { %s1339_s14 = sand.u32 1, %s2022_s15   ;;  %p2555_p4 = scmp.ne.s32.totalorder %s2534_s24, 0 }
 0x2fc   : > { %p2556_p9 = scmp.ge.s32.totalorder %s2042_s20, 2  ;;  %s1340_s21 = scalar_lea.sflag [#allocation4], %s1339_s14 }
 0x2fe   : > { %p1644_p5 = pnand %p2556_p9, %p2555_p4 }
 0x300   : > { %2017 = dma.done.wait (!%p1644_p5), %s1340_s21, 512  }
 0x301   : > { %2019 = vsyncadd (!%p1644_p5), %s1340_s21, 4294966784  ;;  %s24_s20 = sadd.s32 1, %s2042_s20   ;;  %s2557_s23 = sld [smem:[#allocation17_spill]] }
 0x302   : > { %p21_p7 = scmp.ge.s32.totalorder %s24_s20, 4   ;;  %s2558_s28 = sld [smem:[#allocation16_spill]] }
 0x303   : > { %s2559_s15 = smov %s2026_s16  ;;  %s2560_s16 = smov %s2030_s17 }
 0x304   : > { %s2562_s18 = smov %s2038_s19  ;;  %23 = sbr.rel (!%p21_p7) target bundleno = 13 (0xd), region = 102 }
 0x307   : > { %s2561_s17 = smov %s2557_s23 }
 0x308   : > { %s2563_s19 = smov %s2558_s28 }
 0x30b   :  { %1345 = vsyncpa [#allocation3], 1 }
 0x30c   :  { %1347 = vsyncpa [#allocation3 + $0x1], 1 }
 0x30d   :  { %1348 = vsyncpa [#allocation6], 1 }
 0x30e   :  { %1350 = vsyncpa [#allocation6 + $0x1], 1 }
 0x30f   :  { %1351 = vsyncpa [#allocation9], 1 }
 0x310   :  { %1352 = vsyncpa [#allocation4], 1 }
 0x311   :  { %1354 = vsyncpa [#allocation4 + $0x1], 1 }

</bundles_post_ra>
